<compile_context>
chip_gen: v6e
topology: v6e:2x2x1
jax: 0.10.0
libtpu: 0.0.40
codegen_flags: <defaults>
</compile_context>

<pallas_src>
import functools
import math

import jax
import jax.numpy as jnp
from jax import lax
from jax.experimental import pallas as pl
from jax.experimental.pallas import tpu as pltpu


# ---------------------------------------------------------------------------
# tiling helpers
# ---------------------------------------------------------------------------
def _round_up(x, m):
    return ((x + m - 1) // m) * m


def _tile_for(m_pad, cap):
    """Largest legal time tile <= cap.  m_pad is either <=128 (full block) or a
    multiple of 128, so every BlockSpec stays (8,128)-legal."""
    if m_pad <= cap:
        return m_pad
    for c in (512, 256, 128):
        if c <= cap and m_pad % c == 0:
            return c
    return m_pad


# ---------------------------------------------------------------------------
# kernel 1: fused QKV projection  (x @ Wqkv + bqkv, head-major outputs)
# ---------------------------------------------------------------------------
def _qkv_proj_kernel(x_ref, w_ref, b_ref, q_ref, k_ref, v_ref, *,
                     num_heads, dk, d_model, compute_dtype):
    x = x_ref[0].astype(compute_dtype)                            # [TP, d]
    # Single fused MXU pass over N = 3*d (better MXU fill, one weight stream).
    y = jnp.dot(x, w_ref[...],
                preferred_element_type=jnp.float32) + b_ref[...]  # [TP, 3d] f32
    # Scatter per-head slices straight into head-major [1, h, TP, dk] outputs.
    for hh in range(num_heads):
        q_ref[0, hh] = y[:, hh * dk:(hh + 1) * dk].astype(q_ref.dtype)
        k_ref[0, hh] = y[:, d_model + hh * dk:
                         d_model + (hh + 1) * dk].astype(k_ref.dtype)
        v_ref[0, hh] = y[:, 2 * d_model + hh * dk:
                         2 * d_model + (hh + 1) * dk].astype(v_ref.dtype)


# ---------------------------------------------------------------------------
# kernel 2: truncated-window (banded) multi-head attention
#   - n_outer == 1 : single-pass softmax over `sp` window blocks (no scratch)
#   - n_outer  > 1 : online softmax across the last ('arbitrary') grid axis
# ---------------------------------------------------------------------------
def _band_attn_kernel(*refs, num_heads, dk, tq, tk, sp, n_outer, blocks_left,
                      left, right, seq_len, use_band, use_kpad, use_inrange,
                      masking_value):
    n_in = 1 + 2 * sp + (sp if use_kpad else 0)
    q_ref = refs[0]
    k_refs = refs[1:1 + sp]
    v_refs = refs[1 + sp:1 + 2 * sp]
    kp_refs = refs[1 + 2 * sp:n_in]
    o_ref = refs[n_in]
    scratch = refs[n_in + 1:]

    qi = pl.program_id(1)
    ko = pl.program_id(2) if n_outer > 1 else 0
    m_blocks = tq // tk
    q_start = qi * tq
    do_mask = use_band or use_kpad or use_inrange

    if use_band:
        # Intended (unclamped) first key block of this query tile's window.  The DMA
        # index maps clamp to a valid block; clamped/overshoot columns are killed by
        # the col < seq_len check below, so nothing is double-counted.
        start_blk = jnp.maximum(qi * m_blocks - blocks_left, 0)
        base_dist = (lax.broadcasted_iota(jnp.int32, (tq, tk), 1)
                     - lax.broadcasted_iota(jnp.int32, (tq, tk), 0))
    else:
        start_blk = 0
    if use_inrange:
        col1 = lax.broadcasted_iota(jnp.int32, (1, tk), 1)

    q = q_ref[0]                                                  # [h, TQ, dk]

    # --- scores for every kv sub-block of this step (native NT matmul on MXU) ---
    s_list = []
    for j in range(sp):
        s = jnp.einsum("hqd,hkd->hqk", q, k_refs[j][0],
                       preferred_element_type=jnp.float32)        # [h, TQ, TK] f32
        if do_mask:
            ib = start_blk + ko * sp + j          # intended (unclamped) key block
            k_start = ib * tk
            allowed = None
            if use_band:
                dist = (k_start - q_start) + base_dist            # [TQ, TK]
                allowed = (dist >= -left) & (dist <= right)
            cols_ok = None
            if use_inrange:
                cols_ok = (k_start + col1) < seq_len              # [1, TK]
            if use_kpad:
                kp = kp_refs[j][0] > 0                            # [1, TK]
                cols_ok = kp if cols_ok is None else (cols_ok & kp)
            if cols_ok is not None:
                allowed = cols_ok if allowed is None else (allowed & cols_ok)
            s = jnp.where(allowed[None], s, masking_value)
        s_list.append(s)

    m_step = s_list[0].max(axis=-1, keepdims=True)
    for s in s_list[1:]:
        m_step = jnp.maximum(m_step, s.max(axis=-1, keepdims=True))

    def _accumulate(m_row, l0, acc0):
        l_row, acc = l0, acc0
        for j in range(sp):
            p = jnp.exp(s_list[j] - m_row)
            ps = jnp.sum(p, axis=-1, keepdims=True)
            pv = jnp.einsum("hqk,hkd->hqd", p.astype(v_refs[j].dtype),
                            v_refs[j][0], preferred_element_type=jnp.float32)
            l_row = ps if l_row is None else l_row + ps
            acc = pv if acc is None else acc + pv
        return l_row, acc

    def _write_out(l_row, acc):
        inv_l = pl.reciprocal(l_row, approx=True)                 # EUP slot, ~free
        out = acc * inv_l                                         # [h, TQ, dk] f32
        for hh in range(num_heads):
            o_ref[0, :, hh * dk:(hh + 1) * dk] = out[hh].astype(o_ref.dtype)

    if n_outer == 1:
        # Single-pass softmax over the whole (narrow) window: no scratch, no online
        # rescale, exactly one grid step per query tile.
        l_row, acc = _accumulate(m_step, None, None)
        _write_out(l_row, acc)
    else:
        m_scr, l_scr, acc_scr = scratch

        @pl.when(ko == 0)
        def _init():
            m_scr[...] = jnp.full_like(m_scr, -jnp.inf)
            l_scr[...] = jnp.zeros_like(l_scr)
            acc_scr[...] = jnp.zeros_like(acc_scr)

        m_prev = m_scr[...]
        m_new = jnp.maximum(m_prev, m_step)
        alpha = jnp.exp(m_prev - m_new)
        l_row, acc = _accumulate(m_new, alpha * l_scr[...], alpha * acc_scr[...])
        m_scr[...] = m_new
        l_scr[...] = l_row
        acc_scr[...] = acc

        @pl.when(ko == pl.num_programs(2) - 1)
        def _fin():
            _write_out(l_scr[...], acc_scr[...])


# ---------------------------------------------------------------------------
# wrapper
# ---------------------------------------------------------------------------
def truncated_self_attention(x, mask, params, *, h, left_size, right_size,
                             masking_value=-1e15, compute_dtype=jnp.bfloat16,
                             max_kv_blocks_per_step=4):
    """Pallas-backed forward of TruncatedSelfAttention.

    x    : [B, M, d] float32
    mask : [B, M] bool (True = real data) or None
    compute_dtype : MXU operand dtype for Q/K/V (default bf16; f32 accumulation).
    """
    B, M, d = x.shape
    assert d % h == 0
    dk = d // h
    out_dtype = x.dtype

    # ---- pad the time axis so every tile stays (8,128)-legal (no untiled fallback)
    m_pad = _round_up(M, 128) if (M > 128 and M % 128 != 0) else M
    pad = m_pad - M
    x_p = jnp.pad(x, ((0, 0), (0, pad), (0, 0))) if pad else x

    user_mask = mask is not None
    use_band = user_mask                      # mask=None => plain full self-attention
    use_kpad = user_mask or pad > 0
    left = int(left_size) if use_band else 0
    right = int(right_size) if use_band else 0

    if use_kpad:
        if user_mask:
            key_pad = jnp.pad(mask, ((0, 0), (0, pad))) if pad else mask
        else:
            key_pad = jnp.broadcast_to(jnp.arange(m_pad) < M, (B, m_pad))
        mask_i32 = key_pad.astype(jnp.int32).reshape(B, 1, m_pad)

    # ---- fold the 1/d_model softmax scale into Q and fuse the QKV weights --------
    wq = params["wq"] / float(d)
    bq = params["bq"] / float(d)
    w_qkv = jnp.concatenate([wq.T, params["wk"].T, params["wv"].T],
                            axis=1).astype(compute_dtype)            # [d, 3d]
    b_qkv = jnp.concatenate([bq, params["bk"], params["bv"]]
                            ).reshape(1, 3 * d).astype(jnp.float32)
    qkv_bytes = jnp.dtype(compute_dtype).itemsize

    # ---------------------- kernel 1: fused QKV projection -------------------------
    tp = _tile_for(m_pad, 512)
    ntp = m_pad // tp
    head_shape = jax.ShapeDtypeStruct((B, h, m_pad, dk), compute_dtype)
    head_spec = pl.BlockSpec((1, h, tp, dk), lambda b, t: (b, 0, t, 0))

    q_hm, k_hm, v_hm = pl.pallas_call(
        functools.partial(_qkv_proj_kernel, num_heads=h, dk=dk, d_model=d,
                          compute_dtype=compute_dtype),
        out_shape=(head_shape, head_shape, head_shape),
        grid=(B, ntp),
        in_specs=[
            pl.BlockSpec((1, tp, d), lambda b, t: (b, t, 0)),     # x tile
            pl.BlockSpec((d, 3 * d), lambda b, t: (0, 0)),        # fused Wqkv (bf16)
            pl.BlockSpec((1, 3 * d), lambda b, t: (0, 0)),        # fused bias (f32)
        ],
        out_specs=(head_spec, head_spec, head_spec),
        compiler_params=pltpu.CompilerParams(
            dimension_semantics=("parallel", "parallel"),
            vmem_limit_bytes=32 * 1024 * 1024),
        cost_estimate=pl.CostEstimate(
            flops=2 * B * m_pad * d * 3 * d, transcendentals=0,
            bytes_accessed=int(B * m_pad * d * x.dtype.itemsize
                               + 3 * d * d * qkv_bytes
                               + 3 * B * m_pad * d * qkv_bytes)),
    )(x_p, w_qkv, b_qkv)

    # ---------------------- kernel 2: banded attention ------------------------------
    tq = tk = _tile_for(m_pad, 128)
    nq = m_pad // tq
    nkb = m_pad // tk
    m_blocks = tq // tk

    if use_band:
        blocks_left = pl.cdiv(left, tk)
        blocks_right = pl.cdiv(right, tk)
        n_sub_total = min(blocks_left + m_blocks + blocks_right, nkb)
    else:
        blocks_left = 0
        n_sub_total = nkb

    sp = min(n_sub_total, int(max_kv_blocks_per_step))
    n_outer = pl.cdiv(n_sub_total, sp)
    # col < M check is needed whenever key-block indices can be clamped.
    use_inrange = use_band or (n_outer * sp > nkb)

    def _kv_block(qi, ko, j):
        start = jnp.maximum(qi * m_blocks - blocks_left, 0) if use_band else 0
        return jnp.minimum(start + ko * sp + j, nkb - 1)

    if n_outer == 1:
        grid = (B, nq)
        dim_sem = ("parallel", "parallel")
        q_idx = lambda b, qi: (b, 0, qi, 0)
        o_idx = lambda b, qi: (b, qi, 0)

        def kv_idx(j):
            return lambda b, qi: (b, 0, _kv_block(qi, 0, j), 0)

        def kp_idx(j):
            return lambda b, qi: (b, 0, _kv_block(qi, 0, j))
        scratch = []
    else:
        grid = (B, nq, n_outer)
        dim_sem = ("parallel", "parallel", "arbitrary")
        q_idx = lambda b, qi, ko: (b, 0, qi, 0)
        o_idx = lambda b, qi, ko: (b, qi, 0)

        def kv_idx(j):
            return lambda b, qi, ko: (b, 0, _kv_block(qi, ko, j), 0)

        def kp_idx(j):
            return lambda b, qi, ko: (b, 0, _kv_block(qi, ko, j))
        scratch = [pltpu.VMEM((h, tq, 1), jnp.float32),    # running max
                   pltpu.VMEM((h, tq, 1), jnp.float32),    # running denom
                   pltpu.VMEM((h, tq, dk), jnp.float32)]   # running numerator

    in_specs = ([pl.BlockSpec((1, h, tq, dk), q_idx)]
                + [pl.BlockSpec((1, h, tk, dk), kv_idx(j)) for j in range(sp)]
                + [pl.BlockSpec((1, h, tk, dk), kv_idx(j)) for j in range(sp)]
                + ([pl.BlockSpec((1, 1, tk), kp_idx(j)) for j in range(sp)]
                   if use_kpad else []))
    args = ((q_hm,) + (k_hm,) * sp + (v_hm,) * sp
            + ((mask_i32,) * sp if use_kpad else ()))

    out_p = pl.pallas_call(
        functools.partial(_band_attn_kernel, num_heads=h, dk=dk, tq=tq, tk=tk,
                          sp=sp, n_outer=n_outer, blocks_left=blocks_left,
                          left=left, right=right, seq_len=M,
                          use_band=use_band, use_kpad=use_kpad,
                          use_inrange=use_inrange,
                          masking_value=float(masking_value)),
        out_shape=jax.ShapeDtypeStruct((B, m_pad, d), out_dtype),
        grid=grid,
        in_specs=in_specs,
        out_specs=pl.BlockSpec((1, tq, d), o_idx),
        scratch_shapes=scratch,
        compiler_params=pltpu.CompilerParams(
            dimension_semantics=dim_sem,
            vmem_limit_bytes=32 * 1024 * 1024),
        cost_estimate=pl.CostEstimate(
            flops=4 * B * nq * n_outer * sp * h * tq * tk * dk,
            transcendentals=B * nq * n_outer * sp * h * tq * tk,
            bytes_accessed=int(B * nq * (tq + 2 * n_outer * sp * tk) * d * qkv_bytes
                               + B * m_pad * d * jnp.dtype(out_dtype).itemsize)),
    )(*args)

    return out_p[:, :M] if pad else out_p


# ---------------------------------------------------------------------------
# pure-JAX transcription of the PyTorch module (correctness reference)
# ---------------------------------------------------------------------------
def _reference_forward(x, mask, params, *, h, left_size, right_size,
                       masking_value=-1e15):
    B, M, d = x.shape
    dk = d // h
    q = x @ params["wq"].T + params["bq"]
    k = x @ params["wk"].T + params["bk"]
    v = x @ params["wv"].T + params["bv"]
    q = q.reshape(B, M, h, dk).transpose(0, 2, 1, 3)          # [B,h,M,dk]
    kT = k.reshape(B, M, h, dk).transpose(0, 2, 3, 1)         # [B,h,dk,M]
    v = v.reshape(B, M, h, dk).transpose(0, 2, 1, 3)          # [B,h,M,dk]
    att = q @ kT                                              # [B,h,M,M]
    if mask is not None:
        row = jnp.arange(M)[:, None]
        col = jnp.arange(M)[None, :]
        band = (col >= row - left_size) & (col <= row + right_size)
        trunc = mask[:, None, :] & band[None]                 # [B,M,M]
        att = jnp.where(trunc[:, None], att, masking_value)
    att = jax.nn.softmax(att / d, axis=-1)
    out = att @ v
    return out.transpose(0, 2, 1, 3).reshape(B, M, d)


if __name__ == "__main__":
    def make_params(key, d):
        ks = jax.random.split(key, 6)
        scale = 1.0 / math.sqrt(d)
        u = lambda k, shape: jax.random.uniform(k, shape, jnp.float32, -scale, scale)
        return {"wq": u(ks[0], (d, d)), "bq": u(ks[1], (d,)),
                "wk": u(ks[2], (d, d)), "bk": u(ks[3], (d,)),
                "wv": u(ks[4], (d, d)), "bv": u(ks[5], (d,))}

    def check(name, out, ref, valid=None, tol=5e-2):
        if valid is not None:
            out = jnp.where(valid, out, 0.0)
            ref = jnp.where(valid, ref, 0.0)
        assert out.shape == ref.shape, name
        assert bool(jnp.allclose(out, ref, rtol=tol, atol=tol)), name

    key = jax.random.PRNGKey(0)
    k_param, k1, k2, k3, k4 = jax.random.split(key, 5)

    B, D_MODEL, H = 2, 32, 4
    params = make_params(k_param, D_MODEL)

    # 1) small masked config (single tile, single-pass window path), default bf16
    M, LEFT, RIGHT = 16, 3, 2
    x = jax.random.normal(k1, (B, M, D_MODEL), jnp.float32)
    mask = jnp.arange(M)[None, :] < jnp.array([M, 10])[:, None]
    out = jax.block_until_ready(truncated_self_attention(
        x, mask, params, h=H, left_size=LEFT, right_size=RIGHT))
    ref = _reference_forward(x, mask, params, h=H, left_size=LEFT, right_size=RIGHT)
    check("masked-small-bf16", out, ref, valid=mask[..., None])

    # 1b) same config, f32 compute -> tight tolerance
    out32 = jax.block_until_ready(truncated_self_attention(
        x, mask, params, h=H, left_size=LEFT, right_size=RIGHT,
        compute_dtype=jnp.float32))
    check("masked-small-f32", out32, ref, valid=mask[..., None], tol=1e-2)

    # 1c) mask=None -> plain multi-head self attention (unmasked kernel path)
    out_nm = jax.block_until_ready(truncated_self_attention(
        x, None, params, h=H, left_size=LEFT, right_size=RIGHT))
    ref_nm = _reference_forward(x, None, params, h=H, left_size=LEFT, right_size=RIGHT)
    check("no-mask", out_nm, ref_nm)

    # 2) long masked sequence -> multi-tile banded single-pass path (3 kv blocks/tile)
    M2, L2, R2 = 512, 24, 16
    x2 = jax.random.normal(k2, (B, M2, D_MODEL), jnp.float32)
    mask2 = jnp.arange(M2)[None, :] < jnp.array([M2, 300])[:, None]
    out2 = jax.block_until_ready(truncated_self_attention(
        x2, mask2, params, h=H, left_size=L2, right_size=R2))
    ref2 = _reference_forward(x2, mask2, params, h=H, left_size=L2, right_size=R2)
    check("banded-512", out2, ref2, valid=mask2[..., None])

    # 3) non-128-multiple length -> exercises the time-axis padding path
    M3, L3, R3 = 160, 20, 10
    x3 = jax.random.normal(k3, (B, M3, D_MODEL), jnp.float32)
    mask3 = jnp.arange(M3)[None, :] < jnp.array([M3, 150])[:, None]
    out3 = jax.block_until_ready(truncated_self_attention(
        x3, mask3, params, h=H, left_size=L3, right_size=R3))
    ref3 = _reference_forward(x3, mask3, params, h=H, left_size=L3, right_size=R3)
    check("padded-160", out3, ref3, valid=mask3[..., None])

    # 4) mask=None, long sequence -> exercises the online (multi-step) fallback path
    M4 = 640
    x4 = jax.random.normal(k4, (1, M4, D_MODEL), jnp.float32)
    out4 = jax.block_until_ready(truncated_self_attention(
        x4, None, params, h=H, left_size=1, right_size=1))
    ref4 = _reference_forward(x4, None, params, h=H, left_size=1, right_size=1)
    check("full-attn-640-online", out4, ref4)

    print("KERNEL_OK")
</pallas_src>

<mosaic_0001>
module attributes {stable_mosaic.version = 11 : i64} {
  func.func @_qkv_proj_kernel(%arg0: i32, %arg1: i32, %arg2: memref<1x16x32xf32, #tpu.memory_space<vmem>>, %arg3: memref<32x96xbf16, #tpu.memory_space<vmem>>, %arg4: memref<1x96xf32, #tpu.memory_space<vmem>>, %arg5: memref<1x4x16x8xbf16, #tpu.memory_space<vmem>>, %arg6: memref<1x4x16x8xbf16, #tpu.memory_space<vmem>>, %arg7: memref<1x4x16x8xbf16, #tpu.memory_space<vmem>>) attributes {dimension_semantics = [#tpu.dimension_semantics<parallel>, #tpu.dimension_semantics<parallel>], iteration_bounds = array<i64: 2, 1>, scalar_prefetch = 0 : i64, scratch_operands = 0 : i64, tpu.core_type = #tpu.core_type<tc>, window_params = [{transform_indices = @transform_0, window_bounds = array<i64: 1, 16, 32>}, {pipeline_mode = #tpu.pipeline_mode<synchronous>, transform_indices = @transform_1, window_bounds = array<i64: 32, 96>}, {pipeline_mode = #tpu.pipeline_mode<synchronous>, transform_indices = @transform_2, window_bounds = array<i64: 1, 96>}, {transform_indices = @transform_3, window_bounds = array<i64: 1, 4, 16, 8>}, {transform_indices = @transform_4, window_bounds = array<i64: 1, 4, 16, 8>}, {transform_indices = @transform_5, window_bounds = array<i64: 1, 4, 16, 8>}]} {
    %c0 = arith.constant 0 : index
    %c0_0 = arith.constant 0 : index
    %c0_1 = arith.constant 0 : index
    %0 = vector.load %arg2[%c0, %c0_0, %c0_1] : memref<1x16x32xf32, #tpu.memory_space<vmem>>, vector<1x16x32xf32>
    %1 = vector.shape_cast %0 : vector<1x16x32xf32> to vector<16x32xf32>
    %2 = arith.truncf %1 : vector<16x32xf32> to vector<16x32xbf16>
    %c0_2 = arith.constant 0 : index
    %c0_3 = arith.constant 0 : index
    %3 = vector.load %arg3[%c0_2, %c0_3] : memref<32x96xbf16, #tpu.memory_space<vmem>>, vector<32x96xbf16>
    %cst = arith.constant dense<0.000000e+00> : vector<16x96xf32>
    %4 = tpu.matmul %2, %3, %cst {dimension_numbers = #tpu.dot_dimension_numbers<[1], [0], [0], [1], [0, 0, 1, 1], [], []>} : vector<16x32xbf16>, vector<32x96xbf16>, vector<16x96xf32> -> vector<16x96xf32>
    %c0_4 = arith.constant 0 : index
    %c0_5 = arith.constant 0 : index
    %5 = vector.load %arg4[%c0_4, %c0_5] : memref<1x96xf32, #tpu.memory_space<vmem>>, vector<1x96xf32>
    %6 = vector.broadcast %5 : vector<1x96xf32> to vector<16x96xf32>
    %7 = arith.addf %4, %6 : vector<16x96xf32>
    %8 = vector.extract_strided_slice %7 {offsets = [0, 0], sizes = [16, 8], strides = [1, 1]} : vector<16x96xf32> to vector<16x8xf32>
    %9 = arith.truncf %8 : vector<16x8xf32> to vector<16x8xbf16>
    %c0_6 = arith.constant 0 : index
    %c0_7 = arith.constant 0 : index
    %c0_8 = arith.constant 0 : index
    %c0_9 = arith.constant 0 : index
    %10 = vector.load %arg5[%c0_6, %c0_7, %c0_8, %c0_9] : memref<1x4x16x8xbf16, #tpu.memory_space<vmem>>, vector<1x1x16x8xbf16>
    %11 = vector.shape_cast %10 : vector<1x1x16x8xbf16> to vector<16x8xbf16>
    %12 = vector.shape_cast %9 : vector<16x8xbf16> to vector<1x1x16x8xbf16>
    tpu.vector_store %arg5[%c0_6, %c0_7, %c0_8, %c0_9], %12 {strides = array<i32>} : memref<1x4x16x8xbf16, #tpu.memory_space<vmem>>, vector<1x1x16x8xbf16>,
    %13 = vector.extract_strided_slice %7 {offsets = [0, 32], sizes = [16, 8], strides = [1, 1]} : vector<16x96xf32> to vector<16x8xf32>
    %14 = arith.truncf %13 : vector<16x8xf32> to vector<16x8xbf16>
    %c0_10 = arith.constant 0 : index
    %c0_11 = arith.constant 0 : index
    %c0_12 = arith.constant 0 : index
    %c0_13 = arith.constant 0 : index
    %15 = vector.load %arg6[%c0_10, %c0_11, %c0_12, %c0_13] : memref<1x4x16x8xbf16, #tpu.memory_space<vmem>>, vector<1x1x16x8xbf16>
    %16 = vector.shape_cast %15 : vector<1x1x16x8xbf16> to vector<16x8xbf16>
    %17 = vector.shape_cast %14 : vector<16x8xbf16> to vector<1x1x16x8xbf16>
    tpu.vector_store %arg6[%c0_10, %c0_11, %c0_12, %c0_13], %17 {strides = array<i32>} : memref<1x4x16x8xbf16, #tpu.memory_space<vmem>>, vector<1x1x16x8xbf16>,
    %18 = vector.extract_strided_slice %7 {offsets = [0, 64], sizes = [16, 8], strides = [1, 1]} : vector<16x96xf32> to vector<16x8xf32>
    %19 = arith.truncf %18 : vector<16x8xf32> to vector<16x8xbf16>
    %c0_14 = arith.constant 0 : index
    %c0_15 = arith.constant 0 : index
    %c0_16 = arith.constant 0 : index
    %c0_17 = arith.constant 0 : index
    %20 = vector.load %arg7[%c0_14, %c0_15, %c0_16, %c0_17] : memref<1x4x16x8xbf16, #tpu.memory_space<vmem>>, vector<1x1x16x8xbf16>
    %21 = vector.shape_cast %20 : vector<1x1x16x8xbf16> to vector<16x8xbf16>
    %22 = vector.shape_cast %19 : vector<16x8xbf16> to vector<1x1x16x8xbf16>
    tpu.vector_store %arg7[%c0_14, %c0_15, %c0_16, %c0_17], %22 {strides = array<i32>} : memref<1x4x16x8xbf16, #tpu.memory_space<vmem>>, vector<1x1x16x8xbf16>,
    %23 = vector.extract_strided_slice %7 {offsets = [0, 8], sizes = [16, 8], strides = [1, 1]} : vector<16x96xf32> to vector<16x8xf32>
    %24 = arith.truncf %23 : vector<16x8xf32> to vector<16x8xbf16>
    %c0_18 = arith.constant 0 : index
    %c1 = arith.constant 1 : index
    %c0_19 = arith.constant 0 : index
    %c0_20 = arith.constant 0 : index
    %25 = vector.load %arg5[%c0_18, %c1, %c0_19, %c0_20] : memref<1x4x16x8xbf16, #tpu.memory_space<vmem>>, vector<1x1x16x8xbf16>
    %26 = vector.shape_cast %25 : vector<1x1x16x8xbf16> to vector<16x8xbf16>
    %27 = vector.shape_cast %24 : vector<16x8xbf16> to vector<1x1x16x8xbf16>
    tpu.vector_store %arg5[%c0_18, %c1, %c0_19, %c0_20], %27 {strides = array<i32>} : memref<1x4x16x8xbf16, #tpu.memory_space<vmem>>, vector<1x1x16x8xbf16>,
    %28 = vector.extract_strided_slice %7 {offsets = [0, 40], sizes = [16, 8], strides = [1, 1]} : vector<16x96xf32> to vector<16x8xf32>
    %29 = arith.truncf %28 : vector<16x8xf32> to vector<16x8xbf16>
    %c0_21 = arith.constant 0 : index
    %c1_22 = arith.constant 1 : index
    %c0_23 = arith.constant 0 : index
    %c0_24 = arith.constant 0 : index
    %30 = vector.load %arg6[%c0_21, %c1_22, %c0_23, %c0_24] : memref<1x4x16x8xbf16, #tpu.memory_space<vmem>>, vector<1x1x16x8xbf16>
    %31 = vector.shape_cast %30 : vector<1x1x16x8xbf16> to vector<16x8xbf16>
    %32 = vector.shape_cast %29 : vector<16x8xbf16> to vector<1x1x16x8xbf16>
    tpu.vector_store %arg6[%c0_21, %c1_22, %c0_23, %c0_24], %32 {strides = array<i32>} : memref<1x4x16x8xbf16, #tpu.memory_space<vmem>>, vector<1x1x16x8xbf16>,
    %33 = vector.extract_strided_slice %7 {offsets = [0, 72], sizes = [16, 8], strides = [1, 1]} : vector<16x96xf32> to vector<16x8xf32>
    %34 = arith.truncf %33 : vector<16x8xf32> to vector<16x8xbf16>
    %c0_25 = arith.constant 0 : index
    %c1_26 = arith.constant 1 : index
    %c0_27 = arith.constant 0 : index
    %c0_28 = arith.constant 0 : index
    %35 = vector.load %arg7[%c0_25, %c1_26, %c0_27, %c0_28] : memref<1x4x16x8xbf16, #tpu.memory_space<vmem>>, vector<1x1x16x8xbf16>
    %36 = vector.shape_cast %35 : vector<1x1x16x8xbf16> to vector<16x8xbf16>
    %37 = vector.shape_cast %34 : vector<16x8xbf16> to vector<1x1x16x8xbf16>
    tpu.vector_store %arg7[%c0_25, %c1_26, %c0_27, %c0_28], %37 {strides = array<i32>} : memref<1x4x16x8xbf16, #tpu.memory_space<vmem>>, vector<1x1x16x8xbf16>,
    %38 = vector.extract_strided_slice %7 {offsets = [0, 16], sizes = [16, 8], strides = [1, 1]} : vector<16x96xf32> to vector<16x8xf32>
    %39 = arith.truncf %38 : vector<16x8xf32> to vector<16x8xbf16>
    %c0_29 = arith.constant 0 : index
    %c2 = arith.constant 2 : index
    %c0_30 = arith.constant 0 : index
    %c0_31 = arith.constant 0 : index
    %40 = vector.load %arg5[%c0_29, %c2, %c0_30, %c0_31] : memref<1x4x16x8xbf16, #tpu.memory_space<vmem>>, vector<1x1x16x8xbf16>
    %41 = vector.shape_cast %40 : vector<1x1x16x8xbf16> to vector<16x8xbf16>
    %42 = vector.shape_cast %39 : vector<16x8xbf16> to vector<1x1x16x8xbf16>
    tpu.vector_store %arg5[%c0_29, %c2, %c0_30, %c0_31], %42 {strides = array<i32>} : memref<1x4x16x8xbf16, #tpu.memory_space<vmem>>, vector<1x1x16x8xbf16>,
    %43 = vector.extract_strided_slice %7 {offsets = [0, 48], sizes = [16, 8], strides = [1, 1]} : vector<16x96xf32> to vector<16x8xf32>
    %44 = arith.truncf %43 : vector<16x8xf32> to vector<16x8xbf16>
    %c0_32 = arith.constant 0 : index
    %c2_33 = arith.constant 2 : index
    %c0_34 = arith.constant 0 : index
    %c0_35 = arith.constant 0 : index
    %45 = vector.load %arg6[%c0_32, %c2_33, %c0_34, %c0_35] : memref<1x4x16x8xbf16, #tpu.memory_space<vmem>>, vector<1x1x16x8xbf16>
    %46 = vector.shape_cast %45 : vector<1x1x16x8xbf16> to vector<16x8xbf16>
    %47 = vector.shape_cast %44 : vector<16x8xbf16> to vector<1x1x16x8xbf16>
    tpu.vector_store %arg6[%c0_32, %c2_33, %c0_34, %c0_35], %47 {strides = array<i32>} : memref<1x4x16x8xbf16, #tpu.memory_space<vmem>>, vector<1x1x16x8xbf16>,
    %48 = vector.extract_strided_slice %7 {offsets = [0, 80], sizes = [16, 8], strides = [1, 1]} : vector<16x96xf32> to vector<16x8xf32>
    %49 = arith.truncf %48 : vector<16x8xf32> to vector<16x8xbf16>
    %c0_36 = arith.constant 0 : index
    %c2_37 = arith.constant 2 : index
    %c0_38 = arith.constant 0 : index
    %c0_39 = arith.constant 0 : index
    %50 = vector.load %arg7[%c0_36, %c2_37, %c0_38, %c0_39] : memref<1x4x16x8xbf16, #tpu.memory_space<vmem>>, vector<1x1x16x8xbf16>
    %51 = vector.shape_cast %50 : vector<1x1x16x8xbf16> to vector<16x8xbf16>
    %52 = vector.shape_cast %49 : vector<16x8xbf16> to vector<1x1x16x8xbf16>
    tpu.vector_store %arg7[%c0_36, %c2_37, %c0_38, %c0_39], %52 {strides = array<i32>} : memref<1x4x16x8xbf16, #tpu.memory_space<vmem>>, vector<1x1x16x8xbf16>,
    %53 = vector.extract_strided_slice %7 {offsets = [0, 24], sizes = [16, 8], strides = [1, 1]} : vector<16x96xf32> to vector<16x8xf32>
    %54 = arith.truncf %53 : vector<16x8xf32> to vector<16x8xbf16>
    %c0_40 = arith.constant 0 : index
    %c3 = arith.constant 3 : index
    %c0_41 = arith.constant 0 : index
    %c0_42 = arith.constant 0 : index
    %55 = vector.load %arg5[%c0_40, %c3, %c0_41, %c0_42] : memref<1x4x16x8xbf16, #tpu.memory_space<vmem>>, vector<1x1x16x8xbf16>
    %56 = vector.shape_cast %55 : vector<1x1x16x8xbf16> to vector<16x8xbf16>
    %57 = vector.shape_cast %54 : vector<16x8xbf16> to vector<1x1x16x8xbf16>
    tpu.vector_store %arg5[%c0_40, %c3, %c0_41, %c0_42], %57 {strides = array<i32>} : memref<1x4x16x8xbf16, #tpu.memory_space<vmem>>, vector<1x1x16x8xbf16>,
    %58 = vector.extract_strided_slice %7 {offsets = [0, 56], sizes = [16, 8], strides = [1, 1]} : vector<16x96xf32> to vector<16x8xf32>
    %59 = arith.truncf %58 : vector<16x8xf32> to vector<16x8xbf16>
    %c0_43 = arith.constant 0 : index
    %c3_44 = arith.constant 3 : index
    %c0_45 = arith.constant 0 : index
    %c0_46 = arith.constant 0 : index
    %60 = vector.load %arg6[%c0_43, %c3_44, %c0_45, %c0_46] : memref<1x4x16x8xbf16, #tpu.memory_space<vmem>>, vector<1x1x16x8xbf16>
    %61 = vector.shape_cast %60 : vector<1x1x16x8xbf16> to vector<16x8xbf16>
    %62 = vector.shape_cast %59 : vector<16x8xbf16> to vector<1x1x16x8xbf16>
    tpu.vector_store %arg6[%c0_43, %c3_44, %c0_45, %c0_46], %62 {strides = array<i32>} : memref<1x4x16x8xbf16, #tpu.memory_space<vmem>>, vector<1x1x16x8xbf16>,
    %63 = vector.extract_strided_slice %7 {offsets = [0, 88], sizes = [16, 8], strides = [1, 1]} : vector<16x96xf32> to vector<16x8xf32>
    %64 = arith.truncf %63 : vector<16x8xf32> to vector<16x8xbf16>
    %c0_47 = arith.constant 0 : index
    %c3_48 = arith.constant 3 : index
    %c0_49 = arith.constant 0 : index
    %c0_50 = arith.constant 0 : index
    %65 = vector.load %arg7[%c0_47, %c3_48, %c0_49, %c0_50] : memref<1x4x16x8xbf16, #tpu.memory_space<vmem>>, vector<1x1x16x8xbf16>
    %66 = vector.shape_cast %65 : vector<1x1x16x8xbf16> to vector<16x8xbf16>
    %67 = vector.shape_cast %64 : vector<16x8xbf16> to vector<1x1x16x8xbf16>
    tpu.vector_store %arg7[%c0_47, %c3_48, %c0_49, %c0_50], %67 {strides = array<i32>} : memref<1x4x16x8xbf16, #tpu.memory_space<vmem>>, vector<1x1x16x8xbf16>,
    return
  }
  func.func @transform_0(%arg0: i32, %arg1: i32) -> (i32, i32, i32) {
    %c0_i32 = arith.constant 0 : i32
    %c0_i32_0 = arith.constant 0 : i32
    return %arg0, %arg1, %c0_i32 : i32, i32, i32
  }
  func.func @transform_1(%arg0: i32, %arg1: i32) -> (i32, i32) {
    %c0_i32 = arith.constant 0 : i32
    %c0_i32_0 = arith.constant 0 : i32
    %c0_i32_1 = arith.constant 0 : i32
    return %c0_i32, %c0_i32_0 : i32, i32
  }
  func.func @transform_2(%arg0: i32, %arg1: i32) -> (i32, i32) {
    %c0_i32 = arith.constant 0 : i32
    %c0_i32_0 = arith.constant 0 : i32
    %c0_i32_1 = arith.constant 0 : i32
    return %c0_i32, %c0_i32_0 : i32, i32
  }
  func.func @transform_3(%arg0: i32, %arg1: i32) -> (i32, i32, i32, i32) {
    %c0_i32 = arith.constant 0 : i32
    %c0_i32_0 = arith.constant 0 : i32
    %c0_i32_1 = arith.constant 0 : i32
    return %arg0, %c0_i32, %arg1, %c0_i32_0 : i32, i32, i32, i32
  }
  func.func @transform_4(%arg0: i32, %arg1: i32) -> (i32, i32, i32, i32) {
    %c0_i32 = arith.constant 0 : i32
    %c0_i32_0 = arith.constant 0 : i32
    %c0_i32_1 = arith.constant 0 : i32
    return %arg0, %c0_i32, %arg1, %c0_i32_0 : i32, i32, i32, i32
  }
  func.func @transform_5(%arg0: i32, %arg1: i32) -> (i32, i32, i32, i32) {
    %c0_i32 = arith.constant 0 : i32
    %c0_i32_0 = arith.constant 0 : i32
    %c0_i32_1 = arith.constant 0 : i32
    return %arg0, %c0_i32, %arg1, %c0_i32_0 : i32, i32, i32, i32
  }
}

</mosaic_0001>

<bundles_post_ra>
// kernel: tpu_custom_call.1
= control target key start
LH: loop header
LB: loop body
LE: loop exit
PB: predicated region body
PF: predicated region fallthrough
CT: control target
= control target key end

     0   :  { %11 = vsyncpa [#allocation3], 0  ;;  %s1215_s0 = inlined_call_operand.hbm [shape: f32[2,16,32], index: 0, kind: input, shape index: {}]   ;;  %s1216_s1 = inlined_call_operand.hbm [shape: bf16[32,96], index: 1, kind: input, shape index: {}]   ;;  %s1217_s2 = inlined_call_operand.vmem [shape: f32[1,96], index: 2, kind: input, shape index: {}]   ;;  %s1218_s3 = inlined_call_operand.vmem [shape: bf16[2,4,16,8], index: 3, kind: output, shape index: {0}]   ;;  %s1219_s4 = inlined_call_operand.vmem [shape: bf16[2,4,16,8], index: 4, kind: output, shape index: {1}]   ;;  %s1220_s5 = inlined_call_operand.vmem [shape: bf16[2,4,16,8], index: 5, kind: output, shape index: {2}]  }
   0x1   :  { %13 = vsyncpa [#allocation3 + $0x1], 0 }
   0x2   :  { %14 = vsyncpa [#allocation5], 0  ;;  %s1024_s18 = smov 0   ;;  %s1026_s19 = smov 0  }
   0x3   :  { %s1028_s20 = smov 0   ;;  %s1030_s21 = smov 0  }
   0x4   :  { %s1032_s22 = smov 0   ;;  %s1034_s23 = smov 0  }
   0x5 LB: > { %s720_s24 = sadd.s32 4294967295, %s973_s23   ;;  %p54_p0 = scmp.ne.s32.totalorder %s957_s19, %s953_s18  ;;  %s973_s23 = sphi %s1034_s23, %s20_s23   ;;  %s969_s22 = sphi %s1032_s22, %s1230_s22   ;;  %s965_s21 = sphi %s1030_s21, %s1229_s21   ;;  %s961_s20 = sphi %s1028_s20, %s1228_s20   ;;  %s957_s19 = sphi %s1026_s19, %s1227_s19   ;;  %s953_s18 = sphi %s1024_s18, %s1226_s18  }
   0x6   : > { %p1054_p1 = scmp.eq.s32.totalorder %s720_s24, 0  ;;  %p722_p2 = scmp.ge.s32.totalorder %s973_s23, 1 }
   0x7   : > { %p191_p3 = scmp.lt.s32.totalorder %s973_s23, 3  ;;  %s975_s28 = smov [#allocation4]  }
   0x8   : > { %p1062_p4 = por %p1054_p1, %p54_p0  ;;  %s203_s29 = sshll.u32 %s975_s28, 4  ;;  %s204_s29 = int_to_ptr.vmem [resolvable:$true] %s203_s29 }
   0x9   : > { %p1066_p5 = pnand %p722_p2, %p191_p3  ;;  %s32_s6 = sadd.s32 1, %s969_s22 }
   0xa   : > { %s876_s7 = scalar_lea.vmem %s204_s29, 256  ;;  %p884_p12 = scmp.lt.s32.totalorder %s204_s29, %s204_s29 }
   0xb   : > { %p786_p6 = pneg %p1066_p5  ;;  %p877_p9 = scmp.ne.s32.totalorder %s204_s29, %s876_s7 }
   0xc   : > { %p885_p13 = scmp.lt.s32.totalorder %s876_s7, %s876_s7 }
   0xd   : > { %p1074_p7 = pnand %p786_p6, %p1054_p1 }
   0xe   : > { %p886_p0 = por %p885_p13, %p884_p12 }
   0xf   : > { %p867_p8 = pneg %p1074_p7 }
  0x11   : > { %p879_p10 = pnand %p877_p9, %p867_p8 }
  0x13   : > { %p880_p11 = pneg %p879_p10 }
  0x15   : > { %p887_p2 = pnand %p886_p0, %p880_p11 }
  0x17   : > { %890 = shalt.err (!%p887_p2)
}
  0x18   : > { %s976_s8 = smov 64   ;;  %s977_s9 = smov 4  }
  0x19   : > { %789 = dma.hbm_to_vmem [thread:$0]  (!%p1074_p7), %s1216_s1, 256, %s204_s29, [#allocation5], %s976_s8, %s976_s8, %s977_s9  }
  0x1a   : > { %p34_p3 = scmp.ge.s32.totalorder %s32_s6, 2  ;;  %s41_s12 = sadd.s32 1, %s961_s20 }
  0x1b   : > { %p48_p6 = scmp.ne.s32.totalorder %s961_s20, %s957_s19  ;;  %p49_p8 = scmp.eq.s32.totalorder %s973_s23, 0 }
  0x1c   : > { %s1232_s6 = smov (%p34_p3, %s32_s6), 0  ;;  %p795_p10 = scmp.lt.s32.totalorder %s973_s23, 2 }
  0x1d   : > { %p50_p9 = por %p49_p8, %p48_p6  ;;  %s36_s13 = ssub.s32 %s969_s22, %s1232_s6 }
  0x1e   : > { %s220_s14 = sand.u32 1, %s961_s20   ;;  %p39_p11 = scmp.eq.s32.totalorder %s36_s13, 0 }
  0x1f   : > { %s725_s15 = sshll.u32 %s220_s14, 4  ;;  %s763_s16 = sshll.u32 %s969_s22, 8 }
  0x20   : > { %s1098_s17 = scalar_select %p39_p11, %s961_s20, %s41_s12  }
  0x21   : > { %s232_s28 = scalar_lea.hbm %s1215_s0, %s763_s16  ;;  %s224_s29 = scalar_lea.vmem [#allocation2], %s725_s15 }
  0x22   : > { %s233_s30 = sshll.u32 %s224_s29, 4  ;;  %p1103_p7 = pnand %p795_p10, %p50_p9  ;;  %s234_s30 = int_to_ptr.vmem [resolvable:$true] %s233_s30 }
  0x23   : > { %s221_s8 = scalar_lea.sflag [#allocation3], %s220_s14  ;;  %s904_s9 = scalar_lea.vmem %s234_s30, 256 }
  0x24   : > { %p893_p12 = pneg %p1103_p7  ;;  %p905_p13 = scmp.ne.s32.totalorder %s234_s30, %s904_s9 }
  0x25   : > { %s978_s10 = smov [#allocation2]  }
  0x26   : > { %p907_p0 = pnand %p905_p13, %p893_p12  ;;  %s909_s11 = sshll.u32 %s978_s10, 4  ;;  %s910_s11 = int_to_ptr.vmem [resolvable:$false] %s909_s11 }
  0x27   : > { %s911_s12 = scalar_lea.vmem %s910_s11, 512  ;;  %p912_p3 = scmp.lt.s32.totalorder %s234_s30, %s910_s11 }
  0x28   : > { %p908_p2 = pneg %p907_p0  ;;  %p913_p6 = scmp.lt.s32.totalorder %s911_s12, %s904_s9 }
  0x2a   : > { %p914_p8 = por %p913_p6, %p912_p3 }
  0x2c   : > { %p915_p9 = pnand %p914_p8, %p908_p2 }
  0x2e   : > { %918 = shalt.err (!%p915_p9)
}
  0x2f   : > { %s979_s13 = smov 128   ;;  %s980_s15 = smov 8  }
  0x30   : > { %793 = dma.hbm_to_vmem [thread:$0]  (!%p1103_p7), %s232_s28, 256, %s234_s30, %s221_s8, %s979_s13, %s979_s13, %s980_s15  }
  0x31   : > { %245 = sbr.rel (%p1066_p5) target bundleno = 419 (0x1a3), region = 32  ;;  %s247_s14 = sand.u32 (!%p1066_p5), 1, %s957_s19  }
  0x32   : > { %s729_s16 = sshll.u32 (!%p1066_p5), %s247_s14, 4  ;;  %s248_s18 = scalar_lea.sflag (!%p1066_p5), [#allocation3], %s247_s14 }
  0x33   : > { %s251_s24 = scalar_lea.vmem (!%p1066_p5), [#allocation2], %s729_s16 }
  0x36   : > { %944 = dma.done.wait (%p1062_p4), %s248_s18, 256  }
  0x37   : > { %946 = vsyncadd (%p1062_p4), %s248_s18, 4294967040 }
  0x38   : > { %948 = dma.done.wait (%p1054_p1), [#allocation5], 256  }
  0x39   : > { %950 = vsyncadd (%p1054_p1), [#allocation5], 4294967040  ;;  %v981_v0 = vmov 0.0   ;;  %vm982_vm0 = vmmov 0   ;;  %v863_v1 = vld [vmem:[#allocation4 + $0x8] sm:$0xff]   ;;  %v864_v2 = vld [vmem:[#allocation4] sm:$0xff]  }
  0x3a   : > { %772 = vmatprep.subr.bf16.mxu0 %v981_v0  ;;  %776 = vmatprep.mubr.msk.bf16.mxu0 %vm982_vm0, %v981_v0  ;;  %v336_v3 = vld [vmem:[%s251_s24] sm:$0xff]  ;;  %v337_v4 = vld [vmem:[%s251_s24 + $0x8] sm:$0xff]  ;;  %vm362_vm1 = vcmask 261120   ;;  %p306_p4 = scmp.lt.s32.totalorder %s965_s21, 1  ;;  %vm415_vm2 = vcmask 60416   ;;  %s983_s7 = smov 64  }
  0x3b   : > { %773 = vmatpush3.bf16.msra.mxu0 %v863_v1  ;;  %v338_v5 = vpack.c.bf16 %v337_v4, %v336_v3  ;;  %v737_v6 = vld [vmem:[%s1217_s2] ss:$0 sm:$0xff]  ;;  %s984_s8 = smov 96   ;;  %s986_s9 = smov 88  }
  0x3c   : > { %774 = vmatprep.subr.bf16.mxu0 %v981_v0  ;;  %s1234_s21 = smov (!%p306_p4, %s965_s21), 1  ;;  %s987_s10 = smov 56  }
  0x3d   : > { %s1127_s27 = sshll.u32 %s1234_s21, 5  ;;  %s985_s21 = smov 120  }
  0x3e   : > { %s1133_s30 = scalar_lea.vmem %s1218_s3, %s1127_s27  ;;  %s988_s11 = smov 112  }
  0x3f   : > { %775 = vmatpush3.bf16.msra.mxu0 %v864_v2  ;;  %s989_s12 = smov 80   ;;  %s990_s13 = smov 48  }
  0x40   : > { %s991_s15 = smov 104   ;;  %s992_s14 = smov 72  }
  0x41   : > { %s993_s16 = smov 40   ;;  %s1145_s25 = scalar_lea.vmem %s1220_s5, %s1127_s27 }
  0x42   : > { %777 = vmatmul.mubr.msk.bf16.vlgmr.msra.gmra.mxu0 %vm362_vm1, %v338_v5  ;;  %s1151_s29 = scalar_lea.vmem %s1219_s4, %s1127_s27 }
 0x102   : > { %v400_v7 = vpop.f32.mrf.mxu0 }
 0x103   : > { %v401_v8 = vadd.f32 %v737_v6, %v400_v7 }
 0x104   : > { %v778_v9 = vpop.f32.mrf.mxu0 }
 0x105   : > { %v767_v10 = vpack.c.bf16 %v401_v8, %v401_v8 }
 0x106   : > { %v403_v11 = vpop.f32.mrf.mxu0 }
 0x107   : > { %v404_v12 = vadd.f32 %v737_v6, %v403_v11  ;;  %426 = vrot.lane.b32.xlu1 %v767_v10, %s983_s7  ;;  %418 = vrot.lane.b32.xlu0 %v767_v10, %s984_s8  ;;  %416 = vst.msk [vmem:[%s1133_s30] sm:$0xf] %vm415_vm2, %v767_v10 }
 0x108   : > { %v779_v13 = vpop.f32.mrf.mxu0 }
 0x109   : > { %v768_v14 = vpack.c.bf16 %v404_v12, %v404_v12 }
 0x10b   : > { %434 = vrot.lane.b32.xlu0 %v767_v10, %s985_s21  ;;  %428 = vrot.lane.b32.xlu1 %v768_v14, %s983_s7  ;;  %417 = vst.msk [vmem:[%s1133_s30 + $0x4] sm:$0xf] %vm415_vm2, %v768_v14 }
 0x10f   : > { %443 = vrot.lane.b32.xlu0 %v767_v10, %s986_s9  ;;  %436 = vrot.lane.b32.xlu1 %v768_v14, %s985_s21 }
 0x113   : > { %452 = vrot.lane.b32.xlu0 %v767_v10, %s987_s10  ;;  %445 = vrot.lane.b32.xlu1 %v768_v14, %s986_s9 }
 0x117   : > { %461 = vrot.lane.b32.xlu0 %v767_v10, %s988_s11  ;;  %454 = vrot.lane.b32.xlu1 %v768_v14, %s987_s10 }
 0x11b   : > { %470 = vrot.lane.b32.xlu0 %v767_v10, %s989_s12  ;;  %463 = vrot.lane.b32.xlu1 %v768_v14, %s988_s11 }
 0x11f   : > { %479 = vrot.lane.b32.xlu0 %v767_v10, %s990_s13  ;;  %472 = vrot.lane.b32.xlu1 %v768_v14, %s989_s12 }
 0x123   : > { %488 = vrot.lane.b32.xlu0 %v767_v10, %s991_s15  ;;  %481 = vrot.lane.b32.xlu1 %v768_v14, %s990_s13 }
 0x127   : > { %497 = vrot.lane.b32.xlu0 %v767_v10, %s992_s14  ;;  %490 = vrot.lane.b32.xlu1 %v768_v14, %s991_s15 }
 0x12b   : > { %499 = vrot.lane.b32.xlu1 %v768_v14, %s992_s14  ;;  %420 = vrot.lane.b32.xlu0 %v768_v14, %s984_s8 }
 0x12f   : > { %508 = vrot.lane.b32.xlu1 %v768_v14, %s993_s16  ;;  %506 = vrot.lane.b32.xlu0 %v767_v10, %s993_s16 }
 0x179   : > { %v427_v15 = vpop.permute.xlu1 %426  ;;  %v419_v16 = vpop.permute.xlu0 %418 }
 0x17a   : > { %432 = vst.msk [vmem:[%s1145_s25] sm:$0xf] %vm415_vm2, %v427_v15  ;;  %424 = vst.msk [vmem:[%s1151_s29] sm:$0xf] %vm415_vm2, %v419_v16 }
 0x17d   : > { %v435_v17 = vpop.permute.xlu0 %434  ;;  %v429_v18 = vpop.permute.xlu1 %428 }
 0x17e   : > { %743 = vst.msk [vmem:[%s1133_s30 + $0x8] sm:$0xf] %vm415_vm2, %v435_v17  ;;  %433 = vst.msk [vmem:[%s1145_s25 + $0x4] sm:$0xf] %vm415_vm2, %v429_v18 }
 0x181   : > { %v444_v19 = vpop.permute.xlu0 %443  ;;  %v437_v20 = vpop.permute.xlu1 %436 }
 0x182   : > { %745 = vst.msk [vmem:[%s1151_s29 + $0x8] sm:$0xf] %vm415_vm2, %v444_v19  ;;  %744 = vst.msk [vmem:[%s1133_s30 + $0xc] sm:$0xf] %vm415_vm2, %v437_v20 }
 0x185   : > { %v453_v21 = vpop.permute.xlu0 %452  ;;  %v446_v22 = vpop.permute.xlu1 %445 }
 0x186   : > { %747 = vst.msk [vmem:[%s1145_s25 + $0x8] sm:$0xf] %vm415_vm2, %v453_v21  ;;  %746 = vst.msk [vmem:[%s1151_s29 + $0xc] sm:$0xf] %vm415_vm2, %v446_v22 }
 0x189   : > { %v462_v23 = vpop.permute.xlu0 %461  ;;  %v455_v24 = vpop.permute.xlu1 %454 }
 0x18a   : > { %749 = vst.msk [vmem:[%s1133_s30 + $0x10] sm:$0xf] %vm415_vm2, %v462_v23  ;;  %748 = vst.msk [vmem:[%s1145_s25 + $0xc] sm:$0xf] %vm415_vm2, %v455_v24 }
 0x18d   : > { %v471_v25 = vpop.permute.xlu0 %470  ;;  %v464_v26 = vpop.permute.xlu1 %463 }
 0x18e   : > { %751 = vst.msk [vmem:[%s1151_s29 + $0x10] sm:$0xf] %vm415_vm2, %v471_v25  ;;  %750 = vst.msk [vmem:[%s1133_s30 + $0x14] sm:$0xf] %vm415_vm2, %v464_v26 }
 0x191   : > { %v480_v27 = vpop.permute.xlu0 %479  ;;  %v473_v28 = vpop.permute.xlu1 %472 }
 0x192   : > { %753 = vst.msk [vmem:[%s1145_s25 + $0x10] sm:$0xf] %vm415_vm2, %v480_v27  ;;  %752 = vst.msk [vmem:[%s1151_s29 + $0x14] sm:$0xf] %vm415_vm2, %v473_v28 }
 0x195   : > { %v489_v29 = vpop.permute.xlu0 %488  ;;  %v482_v30 = vpop.permute.xlu1 %481 }
 0x196   : > { %755 = vst.msk [vmem:[%s1133_s30 + $0x18] sm:$0xf] %vm415_vm2, %v489_v29  ;;  %754 = vst.msk [vmem:[%s1145_s25 + $0x14] sm:$0xf] %vm415_vm2, %v482_v30 }
 0x199   : > { %v498_v31 = vpop.permute.xlu0 %497  ;;  %v491_v32 = vpop.permute.xlu1 %490 }
 0x19a   : > { %757 = vst.msk [vmem:[%s1151_s29 + $0x18] sm:$0xf] %vm415_vm2, %v498_v31  ;;  %756 = vst.msk [vmem:[%s1133_s30 + $0x1c] sm:$0xf] %vm415_vm2, %v491_v32 }
 0x19d   : > { %v500_v33 = vpop.permute.xlu1 %499  ;;  %v421_v34 = vpop.permute.xlu0 %420 }
 0x19e   : > { %758 = vst.msk [vmem:[%s1151_s29 + $0x1c] sm:$0xf] %vm415_vm2, %v500_v33  ;;  %425 = vst.msk [vmem:[%s1151_s29 + $0x4] sm:$0xf] %vm415_vm2, %v421_v34 }
 0x1a1   : > { %v509_v35 = vpop.permute.xlu1 %508  ;;  %v507_v36 = vpop.permute.xlu0 %506 }
 0x1a2   : > { %760 = vst.msk [vmem:[%s1145_s25 + $0x1c] sm:$0xf] %vm415_vm2, %v509_v35  ;;  %759 = vst.msk [vmem:[%s1145_s25 + $0x18] sm:$0xf] %vm415_vm2, %v507_v36 }
 0x1a3 PF: > { %s20_s23 = sadd.s32 1, %s973_s23   ;;  %s1226_s18 = smov %s957_s19 }
 0x1a4   : > { %p17_p1 = scmp.ge.s32.totalorder %s20_s23, 4   ;;  %s1227_s19 = smov %s961_s20 }
 0x1a5   : > { %s1228_s20 = smov %s1098_s17  ;;  %s1229_s21 = smov %s969_s22 }
 0x1a6   : > { %s1230_s22 = smov %s1232_s6  ;;  %19 = sbr.rel (!%p17_p1) target bundleno = 5 (0x5), region = 109 }
 0x1ab   :  { %595 = vsyncpa [#allocation3], 1 }
 0x1ac   :  { %597 = vsyncpa [#allocation3 + $0x1], 1 }
 0x1ad   :  { %598 = vsyncpa [#allocation5], 1 }

</bundles_post_ra>
